<compile_context>
chip_gen: v7x
topology: tpu7x:2x2x1
jax: 0.10.0
libtpu: 0.0.40
codegen_flags: <defaults>
</compile_context>

<pallas_src>
import jax
import jax.numpy as jnp
from jax.experimental import pallas as pl
from jax.experimental.pallas import tpu as pltpu


def _model_kernel(x1_ref, x2km_ref, inpkm_ref, out_ref):
    """All operands VMEM-resident, flat 2-D, k-major column layouts.

    x1_ref:    (6, 4)  f32
    x2km_ref:  (4, 18) f32   x2_km[:, 6*k + j] = x2[:, 3*j + k]
    inpkm_ref: (1, 18) f32   inp_km[0, 6*k + j] = inp[j, k]
    out_ref:   (6, 18) f32   out_km[i, 6*k + j] = v6[i, j, k]
    """
    f32 = jnp.float32

    # ONE MXU matmul: v1_km[i, 6*k + j] = v2[i, j, k]
    v1_km = jnp.dot(x1_ref[...], x2km_ref[...],
                    preferred_element_type=f32,
                    precision=jax.lax.Precision.HIGHEST)          # (6, 18)

    # Transposed term v2[j, i, k]: per-k 6x6 transpose (XLU, cheap).  k-major
    # layout makes each per-k slice a contiguous static slice — no permutation
    # matmul needed.
    t_km = jnp.concatenate(
        [v1_km[:, 0:6].T, v1_km[:, 6:12].T, v1_km[:, 12:18].T], axis=1)  # (6, 18)

    # v6[i, j, k] = v2[i, j, k] * inp[j, k] + v2[j, i, k]
    # — single VPU FMA, single lane-dense store.
    out_ref[...] = v1_km * inpkm_ref[...] + t_km


def model_forward(x1, x2, inp):
    """x1: (6,4), x2: (4,18), inp: (6,3)  ->  (6,6,3) f32.

    Contract note: the original fuzzer shapes are inconsistent; this wrapper
    requires the repaired shapes above and fails loudly otherwise.
    """
    if x1.shape != (6, 4) or x2.shape != (4, 18) or inp.shape != (6, 3):
        raise ValueError(
            f"model_forward expects x1 (6,4), x2 (4,18), inp (6,3); "
            f"got {x1.shape}, {x2.shape}, {inp.shape}")

    x1 = x1.astype(jnp.float32)

    # Fold the flat->k-major column permutation into the wrapper (static
    # 18-column gather on a 288-byte constant: free / constant-folded in XLA).
    #   x2_km[:, 6*k + j] = x2[:, 3*j + k]
    perm = jnp.array([3 * j + k for k in range(3) for j in range(6)],
                     dtype=jnp.int32)
    x2_km = x2.astype(jnp.float32)[:, perm]                       # (4, 18)

    # inp in k-major flat layout: inp_km[0, 6*k + j] = inp[j, k]
    inp_km = inp.astype(jnp.float32).T.reshape(1, 18)             # (1, 18)

    out_km = pl.pallas_call(
        _model_kernel,
        out_shape=jax.ShapeDtypeStruct((6, 18), jnp.float32),
        in_specs=[
            pl.BlockSpec(memory_space=pltpu.MemorySpace.VMEM),
            pl.BlockSpec(memory_space=pltpu.MemorySpace.VMEM),
            pl.BlockSpec(memory_space=pltpu.MemorySpace.VMEM),
        ],
        out_specs=pl.BlockSpec(memory_space=pltpu.MemorySpace.VMEM),
    )(x1, x2_km, inp_km)

    # out_km[i, 6*k + j] -> (i, k, j) -> (i, j, k): a 432-byte reshape +
    # transpose in the wrapper, fuses to noise in XLA.
    return out_km.reshape(6, 3, 6).transpose(0, 2, 1)


def _reference(x1, x2, inp):
    """Pure-JAX reference mirroring the PyTorch forward exactly."""
    v1 = jnp.dot(x1, x2, precision=jax.lax.Precision.HIGHEST)   # (6, 18)
    v2 = v1.reshape(6, -1, 3)                                    # (6, 6, 3)
    v3 = v2 * inp                                                # inp (6,3) broadcasts
    v4 = jnp.transpose(v3, (1, 0, 2))
    v5 = v4 + v2
    v6 = jnp.transpose(v5, (1, 0, 2))
    return v6


if __name__ == "__main__":
    key = jax.random.PRNGKey(0)
    k1, k2, k3 = jax.random.split(key, 3)
    x1 = jax.random.normal(k1, (6, 4), dtype=jnp.float32)
    x2 = jax.random.normal(k2, (4, 18), dtype=jnp.float32)
    inp = jax.random.normal(k3, (6, 3), dtype=jnp.float32)

    fwd = jax.jit(model_forward)
    out = fwd(x1, x2, inp)
    out = jax.block_until_ready(out)

    ref = _reference(x1, x2, inp)
    assert out.shape == (6, 6, 3), out.shape
    assert jnp.allclose(out, ref, atol=1e-5, rtol=1e-5), "mismatch vs reference"

    print("KERNEL_OK")
</pallas_src>

<mosaic_0001>
module attributes {stable_mosaic.version = 11 : i64} {
  func.func @_model_kernel(%arg0: memref<6x4xf32, #tpu.memory_space<vmem>>, %arg1: memref<4x18xf32, #tpu.memory_space<vmem>>, %arg2: memref<1x18xf32, #tpu.memory_space<vmem>>, %arg3: memref<6x18xf32, #tpu.memory_space<vmem>>) attributes {dimension_semantics = [], scalar_prefetch = 0 : i64, scratch_operands = 0 : i64, tpu.core_type = #tpu.core_type<tc>} {
    %c0 = arith.constant 0 : index
    %c0_0 = arith.constant 0 : index
    %0 = vector.load %arg0[%c0, %c0_0] : memref<6x4xf32, #tpu.memory_space<vmem>>, vector<6x4xf32>
    %c0_1 = arith.constant 0 : index
    %c0_2 = arith.constant 0 : index
    %1 = vector.load %arg1[%c0_1, %c0_2] : memref<4x18xf32, #tpu.memory_space<vmem>>, vector<4x18xf32>
    %cst = arith.constant dense<0.000000e+00> : vector<6x18xf32>
    %2 = tpu.matmul %0, %1, %cst {dimension_numbers = #tpu.dot_dimension_numbers<[1], [0], [0], [1], [0, 0, 1, 1], [], []>, precision = #tpu.contract_precision<fp32>} : vector<6x4xf32>, vector<4x18xf32>, vector<6x18xf32> -> vector<6x18xf32>
    %3 = vector.extract_strided_slice %2 {offsets = [0, 0], sizes = [6, 6], strides = [1, 1]} : vector<6x18xf32> to vector<6x6xf32>
    %4 = tpu.transpose %3, [1, 0] : vector<6x6xf32> -> vector<6x6xf32>
    %5 = vector.extract_strided_slice %2 {offsets = [0, 6], sizes = [6, 6], strides = [1, 1]} : vector<6x18xf32> to vector<6x6xf32>
    %6 = tpu.transpose %5, [1, 0] : vector<6x6xf32> -> vector<6x6xf32>
    %7 = vector.extract_strided_slice %2 {offsets = [0, 12], sizes = [6, 6], strides = [1, 1]} : vector<6x18xf32> to vector<6x6xf32>
    %8 = tpu.transpose %7, [1, 0] : vector<6x6xf32> -> vector<6x6xf32>
    %9 = tpu.concatenate %4, %6, %8 in 1 : vector<6x6xf32>, vector<6x6xf32>, vector<6x6xf32> -> vector<6x18xf32>
    %c0_3 = arith.constant 0 : index
    %c0_4 = arith.constant 0 : index
    %10 = vector.load %arg2[%c0_3, %c0_4] : memref<1x18xf32, #tpu.memory_space<vmem>>, vector<1x18xf32>
    %11 = vector.broadcast %10 : vector<1x18xf32> to vector<6x18xf32>
    %12 = arith.mulf %2, %11 : vector<6x18xf32>
    %13 = arith.addf %12, %9 : vector<6x18xf32>
    %c0_5 = arith.constant 0 : index
    %c0_6 = arith.constant 0 : index
    %14 = vector.load %arg3[%c0_5, %c0_6] : memref<6x18xf32, #tpu.memory_space<vmem>>, vector<6x18xf32>
    tpu.vector_store %arg3[%c0_5, %c0_6], %13 {strides = array<i32>} : memref<6x18xf32, #tpu.memory_space<vmem>>, vector<6x18xf32>,
    return
  }
}

</mosaic_0001>

<bundles_post_ra>
// kernel: model_forward.1
= control target key start
LH: loop header
LB: loop body
LE: loop exit
PB: predicated region body
PF: predicated region fallthrough
CT: control target
= control target key end

     0   :  { %vm20_vm0 = vcmask 1043456   ;;  %vm16_vm1 = vcmask 31744   ;;  %v658_v0 = vmov 0.0   ;;  %vm659_vm2 = vmmov 0   ;;  %s662_s16 = smov 6   ;;  %s663_s17 = smov 12   ;;  %s702_s1 = inlined_call_operand.vmem [shape: f32[4,18], index: 1, kind: input, shape index: {}]   ;;  %s703_s0 = inlined_call_operand.vmem [shape: f32[6,4], index: 0, kind: input, shape index: {}]   ;;  %s704_s2 = inlined_call_operand.vmem [shape: f32[1,18], index: 2, kind: input, shape index: {}]   ;;  %s705_s3 = inlined_call_operand.vmem [shape: f32[6,18], index: 3, kind: output, shape index: {}]  }
   0x1   :  { %628 = vmatprep.subr.mxu0 %v658_v0  ;;  %v15_v1 = vld [vmem:[%s702_s1] sm:$0xf]  ;;  %630 = vmatprep.mubr.msk.f32.mxu0 %vm659_vm2, %v658_v0  ;;  %s661_s1 = smov 116   ;;  %vm581_vm3 = vcmask 48128   ;;  %vm583_vm4 = vcmask 97280   ;;  %vm594_vm5 = vcmask 144384  }
   0x2   :  { %v14_v2 = vld [vmem:[%s703_s0] sm:$0x3f]  ;;  %v22_v3 = vsel %vm20_vm0, %v15_v1, 0  ;;  %613 = vmatprep.subr.mxu1 %v658_v0  ;;  %615 = vmatprep.mubr.msk.f32.mxu1 %vm659_vm2, %v658_v0  ;;  %s660_s0 = smov 122  }
   0x3   :  { %v18_v4 = vsel %vm16_vm1, %v14_v2, 0  ;;  %v25_v5 = vand.u32 4294901760, %v22_v3  ;;  %v600_v26 = vld [vmem:[%s704_s2] ss:$0 sm:$0xff] }
   0x4   :  { %v90_v6 = vand.u32 4294901760, %v18_v4 }
   0x5   :  { %v102_v7 = vsub.f32 %v22_v3, %v25_v5  ;;  %629 = vmatpush3.msra.mxu0 %v25_v5  ;;  %614 = vmatpush3.msra.mxu1 %v25_v5 }
   0x6   :  { %v91_v8 = vsub.f32 %v18_v4, %v90_v6  ;;  %618 = vmatprep.subr.mxu1 %v658_v0  ;;  %633 = vmatprep.subr.mxu0 %v658_v0 }
   0x7   :  { %v103_v10 = vand.u32 4294901760, %v102_v7 }
   0x8   :  { %v92_v9 = vand.u32 4294901760, %v91_v8 }
   0x9   :  { %v104_v12 = vsub.f32 %v102_v7, %v103_v10 }
   0xa   :  { %631 = vmatmul.mubr.f32.vlgmr.msra.gmra.mrb[0].mxu0 %v92_v9  ;;  %v93_v11 = vsub.f32 %v91_v8, %v92_v9 }
   0xb   :  { %634 = vmatpush3.msra.mxu0 %v103_v10  ;;  %635 = vmatprep.mubr.msk.f32.mxu0 %vm659_vm2, %v658_v0  ;;  %v105_v14 = vand.u32 4294901760, %v104_v12 }
   0xc   :  { %v94_v13 = vand.u32 4294901760, %v93_v11  ;;  %638 = vmatprep.subr.mxu0 %v658_v0 }
   0xe   :  { %616 = vmatmul.mubr.f32.vlgmr.msra.gmra.mrb[0].mxu1 %v94_v13 }
   0xf   :  { %619 = vmatpush3.msra.mxu1 %v105_v14  ;;  %620 = vmatprep.mubr.msk.f32.mxu1 %vm659_vm2, %v658_v0 }
  0x10   :  { %623 = vmatprep.subr.mxu1 %v658_v0 }
  0x12   :  { %636 = vmatmul.mubr.f32.vlgmr.msra.gmra.mrb[0].mxu0 %v90_v6 }
  0x13   :  { %639 = vmatpush3.msra.mxu0 %v25_v5  ;;  %640 = vmatprep.mubr.msk.f32.mxu0 %vm659_vm2, %v658_v0 }
  0x16   :  { %621 = vmatmul.mubr.f32.vlgmr.msra.gmra.mrb[0].mxu1 %v90_v6 }
  0x17   :  { %624 = vmatpush3.msra.mxu1 %v102_v7  ;;  %625 = vmatprep.mubr.msk.f32.mxu1 %vm659_vm2, %v658_v0 }
  0x1a   :  { %641 = vmatmul.mubr.f32.vlgmr.msra.gmra.mrb[0].mxu0 %v90_v6 }
  0x1e   :  { %626 = vmatmul.mubr.f32.vlgmr.msra.gmra.mrb[0].mxu1 %v91_v8 }
  0xed   :  { %v466_v15 = vpop.f32.mrb[0].mxu0 }
  0xee   :  { %v642_v16 = vpop.f32.mrb[1].mxu0 }
  0xf1   :  { %v246_v17 = vpop.f32.mrb[0].mxu1 }
  0xf2   :  { %v643_v18 = vadd.f32 %v466_v15, %v246_v17  ;;  %v627_v19 = vpop.f32.mrb[1].mxu1 }
  0xf4   :  { %503 = vrot.lane.b32.xlu0 %v643_v18, %s660_s0  ;;  %v592_v29 = vmul.f32 %v643_v18, %v600_v26 }
  0xf8   :  { %538 = vrot.lane.b32.xlu0 %v643_v18, %s661_s1 }
 0x116   :  { %470 = vxpose.xlu0.b32.start.end [1/1] (short) (narrow) %v643_v18, 8 }
 0x166   :  { %v504_v20 = vpop.permute.xlu0 %503 }
 0x167   :  { %506 = vxpose.xlu1.b32.start.end [1/1] (short) (narrow) %v504_v20, 8 }
 0x16a   :  { %v539_v21 = vpop.permute.xlu0 %538 }
 0x16b   :  { %541 = vxpose.xlu1.b32.start.end [1/1] (short) (narrow) %v539_v21, 8 }
 0x196   :  { %v486_v24 = vpop.trf.xlu0 }
 0x1e7   :  { %v522_v22 = vpop.trf.xlu1 }
 0x1e8   :  { %574 = vrot.lane.b32.xlu1 %v522_v22, %s662_s16 }
 0x1eb   :  { %v557_v23 = vpop.trf.xlu1 }
 0x1ec   :  { %578 = vrot.lane.b32.xlu0 %v557_v23, %s663_s17 }
 0x25a   :  { %v575_v25 = vpop.permute.xlu1 %574 }
 0x25b   :  { %v582_v27 = vsel %vm581_vm3, %v486_v24, %v575_v25 }
 0x25e   :  { %v579_v28 = vpop.permute.xlu0 %578 }
 0x25f   :  { %v584_v30 = vsel %vm583_vm4, %v582_v27, %v579_v28 }
 0x260   :  { %v593_v31 = vadd.f32 %v592_v29, %v584_v30 }
 0x262   :  { %595 = vst.msk [vmem:[%s705_s3] sm:$0x3f] %vm594_vm5, %v593_v31 }

</bundles_post_ra>
